<compile_context>
chip_gen: v7x
topology: tpu7x:2x2x1
jax: 0.10.0
libtpu: 0.0.40
codegen_flags: <defaults>
</compile_context>

<pallas_src>
import functools

import jax
import jax.numpy as jnp
from jax.experimental import pallas as pl
from jax.experimental.pallas import tpu as pltpu


_SUBLANE = {4: 8, 2: 16, 1: 32}


def _round_up(x, m):
    return ((x + m - 1) // m) * m


def _apply_activation(x, activation):
    if activation == "relu":
        return jnp.maximum(x, 0.0)
    if activation == "tanh":
        return jnp.tanh(x)
    if activation == "gelu":
        return jax.nn.gelu(x, approximate=False)   # PyTorch nn.GELU default (exact erf)
    if activation in (None, "identity"):
        return x
    raise ValueError(f"unsupported activation: {activation}")


def _vmem_cap_bytes():
    """Chip-aware scoped-VMEM cap: ~96 MiB on v5e/v6e (128 MiB phys), 48 MiB on v7x (64 MiB phys)."""
    try:
        cap = int(getattr(pltpu.get_tpu_info(), "vmem_capacity_bytes", 64 << 20))
    except Exception:
        cap = 64 << 20
    return (96 << 20) if cap >= (100 << 20) else (48 << 20)


def _divisor_tile(total, target, unit=128):
    """Largest multiple of `unit` that divides `total` (a multiple of unit) and is <= target."""
    q = total // unit
    dmax = max(1, min(q, max(1, target // unit)))
    for d in range(dmax, 0, -1):
        if q % d == 0:
            return d * unit
    return unit


def _shrink_tm(Mp, tm, sub):
    """Largest multiple of `sub` that divides Mp and is < tm (falls back to sub)."""
    t = tm - sub
    while t >= sub:
        if Mp % t == 0:
            return t
        t -= sub
    return sub


# ---------------------------------------------------------------------------
# Kernels
# ---------------------------------------------------------------------------
def _fused_mlp_kernel(*refs, n_layers, true_dims, activation, use_ln, eps):
    """Whole MLP in one kernel: weights stay resident in VMEM, activations never hit HBM."""
    if use_ln:
        x_ref, w_ref, b_ref, g_ref, be_ref, o_ref = refs
    else:
        x_ref, w_ref, b_ref, o_ref = refs
        g_ref = be_ref = None

    h = x_ref[...].astype(jnp.float32)
    for l in range(n_layers):
        # bf16 MXU feed, f32 accumulation. Weights are already bf16 in VMEM.
        s = jnp.dot(h.astype(jnp.bfloat16), w_ref[l],
                    preferred_element_type=jnp.float32)
        s = s + b_ref[l]
        if use_ln:
            n = true_dims[l]
            inv_n = 1.0 / float(n)
            # Padded columns of s are exactly zero (zero-padded W cols / bias),
            # so the full-width sum equals the sum over the n real columns.
            mean = jnp.sum(s, axis=-1, keepdims=True) * inv_n
            col = jax.lax.broadcasted_iota(jnp.int32, s.shape, 1)
            d = jnp.where(col < n, s - mean, 0.0)        # masked, centered (two-pass) variance
            var = jnp.sum(d * d, axis=-1, keepdims=True) * inv_n
            s = d * jax.lax.rsqrt(var + eps) * g_ref[l] + be_ref[l]
        h = _apply_activation(s, activation)             # act(0)=0 keeps padded cols zero
    o_ref[...] = h.astype(o_ref.dtype)


def _linear_act_kernel(x_ref, w_ref, b_ref, o_ref, acc_ref, *, activation):
    """out = act(x @ w + b), tiled over (M, N, K); K is the reduction axis."""
    @pl.when(pl.program_id(2) == 0)
    def _():
        acc_ref[...] = jnp.zeros_like(acc_ref)

    acc_ref[...] += jnp.dot(x_ref[...].astype(jnp.bfloat16), w_ref[...],
                            preferred_element_type=jnp.float32)

    @pl.when(pl.program_id(2) == pl.num_programs(2) - 1)
    def _():
        out = acc_ref[...] + b_ref[...]
        out = _apply_activation(out, activation)
        o_ref[...] = out.astype(o_ref.dtype)


def _linear_ln_act_kernel(x_ref, w_ref, b_ref, g_ref, be_ref, o_ref, acc_ref, *,
                          activation, eps, true_n):
    """out = act(LayerNorm(x @ w + b)); the whole output row lives in one tile."""
    @pl.when(pl.program_id(2) == 0)
    def _():
        acc_ref[...] = jnp.zeros_like(acc_ref)

    acc_ref[...] += jnp.dot(x_ref[...].astype(jnp.bfloat16), w_ref[...],
                            preferred_element_type=jnp.float32)

    @pl.when(pl.program_id(2) == pl.num_programs(2) - 1)
    def _():
        s = acc_ref[...] + b_ref[...]
        inv_n = 1.0 / float(true_n)
        mean = jnp.sum(s, axis=-1, keepdims=True) * inv_n     # padded cols of s are zero
        col = jax.lax.broadcasted_iota(jnp.int32, s.shape, 1)
        d = jnp.where(col < true_n, s - mean, 0.0)             # masked, centered variance
        var = jnp.sum(d * d, axis=-1, keepdims=True) * inv_n
        out = d * jax.lax.rsqrt(var + eps) * g_ref[...] + be_ref[...]
        out = _apply_activation(out, activation)
        o_ref[...] = out.astype(o_ref.dtype)


# ---------------------------------------------------------------------------
# Parameter preparation (padding / bf16 cast hoisted out of the hot path)
# ---------------------------------------------------------------------------
def prepare_mlp_params(params, input_dim, *, force_per_layer=False,
                       fused_weight_budget_bytes=8 << 20):
    dims = [int(p["w"].shape[1]) for p in params]
    L = len(params)

    def _gamma(p, n):
        return p.get("gamma", jnp.ones((n,), jnp.float32))

    def _beta(p, n):
        return p.get("beta", jnp.zeros((n,), jnp.float32))

    Dp = _round_up(max([int(input_dim)] + dims), 128)
    if (not force_per_layer) and (L * Dp * Dp * 2 <= fused_weight_budget_bytes):
        # Fully-fused single-kernel representation: stacked (L, Dp, Dp) bf16 weights.
        w_stack = jnp.stack([
            jnp.pad(p["w"].astype(jnp.float32),
                    ((0, Dp - p["w"].shape[0]), (0, Dp - p["w"].shape[1])))
            for p in params]).astype(jnp.bfloat16)
        b_stack = jnp.stack([
            jnp.pad(p["b"].astype(jnp.float32), (0, Dp - dims[i])).reshape(1, Dp)
            for i, p in enumerate(params)])
        g_stack = jnp.stack([
            jnp.pad(_gamma(p, dims[i]).astype(jnp.float32), (0, Dp - dims[i])).reshape(1, Dp)
            for i, p in enumerate(params)])
        be_stack = jnp.stack([
            jnp.pad(_beta(p, dims[i]).astype(jnp.float32), (0, Dp - dims[i])).reshape(1, Dp)
            for i, p in enumerate(params)])
        return dict(mode="fused", w=w_stack, b=b_stack, gamma=g_stack, beta=be_stack,
                    dims=tuple(dims), input_dim=int(input_dim), Dp=Dp, L=L)

    # Per-layer representation (large models): padded bf16 weights, f32 epilogue params.
    layers = []
    prev = int(input_dim)
    for i, p in enumerate(params):
        K, N = prev, dims[i]
        Kp, Np = _round_up(K, 128), _round_up(N, 128)
        layers.append(dict(
            w=jnp.pad(p["w"].astype(jnp.float32), ((0, Kp - K), (0, Np - N))).astype(jnp.bfloat16),
            b=jnp.pad(p["b"].astype(jnp.float32), (0, Np - N)).reshape(1, Np),
            gamma=jnp.pad(_gamma(p, N).astype(jnp.float32), (0, Np - N)).reshape(1, Np),
            beta=jnp.pad(_beta(p, N).astype(jnp.float32), (0, Np - N)).reshape(1, Np),
            K=K, N=N, Kp=Kp, Np=Np))
        prev = N
    return dict(mode="layers", layers=layers, dims=tuple(dims), input_dim=int(input_dim))


# ---------------------------------------------------------------------------
# Forward wrappers
# ---------------------------------------------------------------------------
def _row_tile(M, sub):
    """Row tile: <=256, sublane-aligned, and aiming for >=2 tiles (2 TensorCores on v7x)."""
    Mp0 = _round_up(M, sub)
    tm = max(sub, min(256, _round_up(-(-Mp0 // 2), sub)))
    Mp = _round_up(M, tm)
    return tm, Mp


def _fused_forward(x, prep, *, activation, use_layernorm, eps):
    M, K = x.shape
    assert K == prep["input_dim"]
    Dp, L, dims = prep["Dp"], prep["L"], prep["dims"]
    out_dtype = x.dtype
    xb = jnp.dtype(x.dtype).itemsize
    sub = _SUBLANE[xb]
    tm, Mp = _row_tile(M, sub)

    xp = jnp.pad(x, ((0, Mp - M), (0, Dp - K)))   # single pad; final slice below

    kernel = functools.partial(_fused_mlp_kernel, n_layers=L, true_dims=dims,
                               activation=activation, use_ln=use_layernorm, eps=eps)

    in_specs = [
        pl.BlockSpec((tm, Dp), lambda i: (i, 0)),
        pl.BlockSpec((L, Dp, Dp), lambda i: (0, 0, 0)),
        pl.BlockSpec((L, 1, Dp), lambda i: (0, 0, 0)),
    ]
    operands = [xp, prep["w"], prep["b"]]
    if use_layernorm:
        in_specs += [pl.BlockSpec((L, 1, Dp), lambda i: (0, 0, 0)),
                     pl.BlockSpec((L, 1, Dp), lambda i: (0, 0, 0))]
        operands += [prep["gamma"], prep["beta"]]

    wbytes = L * Dp * Dp * 2
    cap = _vmem_cap_bytes()
    vmem_need = 2 * wbytes + 6 * L * Dp * 4 + 4 * tm * Dp * xb + tm * Dp * 4 + (2 << 20)
    vmem_limit = int(min(cap, max(vmem_need, 32 << 20)))

    flops = 2 * Mp * L * Dp * Dp
    transc = Mp * L * Dp if activation in ("tanh", "gelu") else 0
    bytes_acc = Mp * Dp * xb + wbytes + 4 * L * Dp * 4 + Mp * Dp * xb

    out = pl.pallas_call(
        kernel,
        out_shape=jax.ShapeDtypeStruct((Mp, Dp), out_dtype),
        grid_spec=pltpu.PrefetchScalarGridSpec(
            num_scalar_prefetch=0,
            grid=(Mp // tm,),
            in_specs=in_specs,
            out_specs=pl.BlockSpec((tm, Dp), lambda i: (i, 0)),
        ),
        compiler_params=pltpu.CompilerParams(
            dimension_semantics=("parallel",),
            vmem_limit_bytes=vmem_limit,
        ),
        cost_estimate=pl.CostEstimate(flops=int(flops), transcendentals=int(transc),
                                      bytes_accessed=int(bytes_acc)),
    )(*operands)
    return out[:M, :dims[-1]]


def _linear_layer_call(h, lyr, *, tm, activation, use_ln, eps, out_dtype):
    """One CustomMLP layer on an already-padded activation h:(Mp,Kp). Returns padded (Mp,Np)."""
    Mp = h.shape[0]
    Kp, Np, N = lyr["Kp"], lyr["Np"], lyr["N"]
    assert h.shape[1] == Kp
    xb = jnp.dtype(h.dtype).itemsize
    ob = jnp.dtype(out_dtype).itemsize
    sub = _SUBLANE[xb]
    cap = _vmem_cap_bytes()
    big_vmem = cap >= (96 << 20)   # v5e / v6e

    # Lane-dense tiles. LN epilogue needs the full row in one tile.
    if use_ln:
        tn = Np
    else:
        tn = _divisor_tile(Np, 1024 if big_vmem else 512)
    # Prefer a single reduction step (tk = Kp) to avoid accumulator RMW passes.
    tk = _divisor_tile(Kp, Kp if Kp <= (4096 if big_vmem else 2048)
                       else (1024 if big_vmem else 512))
    tm_l = tm

    def fp(tm_, tk_, tn_):
        # double-buffered x (orig dtype), W (bf16), bias/gamma/beta, out, + f32 acc + headroom
        return (2 * tm_ * tk_ * xb + 2 * tk_ * tn_ * 2 + 6 * tn_ * 4
                + 2 * tm_ * tn_ * ob + tm_ * tn_ * 4 + (2 << 20))

    # VMEM-driven tile shrinking (v7x LN-path safety): tk -> tn (no-LN) -> tm.
    while fp(tm_l, tk, tn) > cap and tk > 128:
        new_tk = _divisor_tile(Kp, tk // 2)
        if new_tk == tk:
            break
        tk = new_tk
    if not use_ln:
        while fp(tm_l, tk, tn) > cap and tn > 128:
            new_tn = _divisor_tile(Np, tn // 2)
            if new_tn == tn:
                break
            tn = new_tn
    while fp(tm_l, tk, tn) > cap and tm_l > sub:
        tm_l = _shrink_tm(Mp, tm_l, sub)

    grid = (Mp // tm_l, Np // tn, Kp // tk)

    vec_spec = pl.BlockSpec((1, tn), lambda i, j, k: (0, j))
    in_specs = [
        pl.BlockSpec((tm_l, tk), lambda i, j, k: (i, k)),
        pl.BlockSpec((tk, tn), lambda i, j, k: (k, j)),
        vec_spec,
    ]
    operands = [h, lyr["w"], lyr["b"]]
    if use_ln:
        in_specs += [vec_spec, vec_spec]
        operands += [lyr["gamma"], lyr["beta"]]
        kernel = functools.partial(_linear_ln_act_kernel, activation=activation,
                                   eps=eps, true_n=N)
    else:
        kernel = functools.partial(_linear_act_kernel, activation=activation)

    vmem_limit = int(min(cap, max(fp(tm_l, tk, tn), 32 << 20)))
    flops = 2 * Mp * Kp * Np
    transc = Mp * Np if activation in ("tanh", "gelu") else 0
    bytes_acc = Mp * Kp * xb + Kp * Np * 2 + Mp * Np * ob + 4 * Np * 4

    # TODO(synk): on v5e a pipeline_mode=pl.Buffered(3) on the W BlockSpec can further
    # hide DMA latency for tiny-batch layers; left at the default depth here.
    return pl.pallas_call(
        kernel,
        out_shape=jax.ShapeDtypeStruct((Mp, Np), out_dtype),
        grid_spec=pltpu.PrefetchScalarGridSpec(
            num_scalar_prefetch=0,
            grid=grid,
            in_specs=in_specs,
            out_specs=pl.BlockSpec((tm_l, tn), lambda i, j, k: (i, j)),
            scratch_shapes=[pltpu.VMEM((tm_l, tn), jnp.float32)],
        ),
        compiler_params=pltpu.CompilerParams(
            dimension_semantics=("parallel", "parallel", "arbitrary"),
            vmem_limit_bytes=vmem_limit,
        ),
        cost_estimate=pl.CostEstimate(flops=int(flops), transcendentals=int(transc),
                                      bytes_accessed=int(bytes_acc)),
    )(*operands)


def _per_layer_forward(x, prep, *, activation, use_layernorm, eps):
    layers = prep["layers"]
    M, K = x.shape
    assert K == prep["input_dim"]
    out_dtype = x.dtype
    sub = _SUBLANE[jnp.dtype(x.dtype).itemsize]
    tm, Mp = _row_tile(M, sub)

    # Pad once; carry the padded activation between layers, slice only at the end.
    h = jnp.pad(x, ((0, Mp - M), (0, layers[0]["Kp"] - K)))
    for lyr in layers:
        h = _linear_layer_call(h, lyr, tm=tm, activation=activation,
                               use_ln=use_layernorm, eps=eps, out_dtype=out_dtype)
    return h[:M, :layers[-1]["N"]]


def custom_mlp_forward(x, prepared, *, activation="relu", use_layernorm=False, eps=1e-5):
    """Matches CustomMLP.forward with use_batchnorm=False, dropout in eval mode."""
    # TODO(synk): nn.Dropout (p=0.1) is identity at inference; training-time stochastic
    # masks and nn.BatchNorm1d (use_batchnorm=True) are not implemented.
    if isinstance(prepared, (list, tuple)):           # convenience: accept raw params
        prepared = prepare_mlp_params(prepared, x.shape[1])
    if prepared["mode"] == "fused":
        return _fused_forward(x, prepared, activation=activation,
                              use_layernorm=use_layernorm, eps=eps)
    return _per_layer_forward(x, prepared, activation=activation,
                              use_layernorm=use_layernorm, eps=eps)


# ---------------------------------------------------------------------------
# Reference + init
# ---------------------------------------------------------------------------
def mlp_reference(x, params, *, activation="relu", use_layernorm=False, eps=1e-5):
    """Pure-JAX reference mirroring the kernels' numerics (bf16 MXU feed, f32 accumulate)."""
    h = x.astype(jnp.float32)
    for p in params:
        s = jnp.dot(h.astype(jnp.bfloat16), p["w"].astype(jnp.bfloat16),
                    preferred_element_type=jnp.float32) + p["b"].astype(jnp.float32)
        if use_layernorm:
            mean = jnp.mean(s, axis=-1, keepdims=True)
            var = jnp.mean((s - mean) ** 2, axis=-1, keepdims=True)
            s = (s - mean) * jax.lax.rsqrt(var + eps) * p["gamma"].astype(jnp.float32) \
                + p["beta"].astype(jnp.float32)
        h = _apply_activation(s, activation)
    return h.astype(x.dtype)


def init_mlp_params(key, input_dim, layer_dims, dtype=jnp.float32):
    """kaiming_normal_(fan_in, gain=sqrt(2)) weights, zero bias, LN affine params."""
    params = []
    prev = input_dim
    for dim in layer_dims:
        key, kw, kg, kb = jax.random.split(key, 4)
        std = (2.0 / prev) ** 0.5
        w = (std * jax.random.normal(kw, (prev, dim))).astype(dtype)  # stored as W^T: (in, out)
        b = jnp.zeros((dim,), dtype=dtype)
        gamma = (1.0 + 0.1 * jax.random.normal(kg, (dim,))).astype(dtype)
        beta = (0.1 * jax.random.normal(kb, (dim,))).astype(dtype)
        params.append(dict(w=w, b=b, gamma=gamma, beta=beta))
        prev = dim
    return params


if __name__ == "__main__":
    batch, input_dim = 8, 32
    layer_dims = [64, 32]

    key = jax.random.PRNGKey(0)
    kx, kp = jax.random.split(key)
    x = jax.random.normal(kx, (batch, input_dim), dtype=jnp.float32)
    params = init_mlp_params(kp, input_dim, layer_dims)

    ref = mlp_reference(x, params, activation="relu", use_layernorm=False)
    ref_ln = mlp_reference(x, params, activation="relu", use_layernorm=True)

    # --- fully-fused single-kernel path (weights fit in VMEM) ---
    prep_fused = prepare_mlp_params(params, input_dim)
    assert prep_fused["mode"] == "fused"
    out = jax.block_until_ready(
        custom_mlp_forward(x, prep_fused, activation="relu", use_layernorm=False))
    assert out.shape == (batch, layer_dims[-1])
    assert jnp.allclose(out, ref, atol=2e-2, rtol=2e-2), "fused mismatch (no LN)"

    out_ln = jax.block_until_ready(
        custom_mlp_forward(x, prep_fused, activation="relu", use_layernorm=True))
    assert jnp.allclose(out_ln, ref_ln, atol=2e-2, rtol=2e-2), "fused mismatch (LN)"

    # --- per-layer tiled path (large-model fallback), forced for coverage ---
    prep_layers = prepare_mlp_params(params, input_dim, force_per_layer=True)
    out2 = jax.block_until_ready(
        custom_mlp_forward(x, prep_layers, activation="relu", use_layernorm=False))
    assert jnp.allclose(out2, ref, atol=2e-2, rtol=2e-2), "per-layer mismatch (no LN)"

    out2_ln = jax.block_until_ready(
        custom_mlp_forward(x, prep_layers, activation="relu", use_layernorm=True))
    assert jnp.allclose(out2_ln, ref_ln, atol=2e-2, rtol=2e-2), "per-layer mismatch (LN)"

    print("KERNEL_OK")
</pallas_src>

<mosaic_0001>
module attributes {stable_mosaic.version = 11 : i64} {
  func.func @_fused_mlp_kernel(%arg0: i32, %arg1: memref<8x128xf32, #tpu.memory_space<vmem>>, %arg2: memref<2x128x128xbf16, #tpu.memory_space<vmem>>, %arg3: memref<2x1x128xf32, #tpu.memory_space<vmem>>, %arg4: memref<8x128xf32, #tpu.memory_space<vmem>>) attributes {dimension_semantics = [#tpu.dimension_semantics<parallel>], iteration_bounds = array<i64: 1>, scalar_prefetch = 0 : i64, scratch_operands = 0 : i64, tpu.core_type = #tpu.core_type<tc>, window_params = [{transform_indices = @transform_0, window_bounds = array<i64: 8, 128>}, {pipeline_mode = #tpu.pipeline_mode<synchronous>, transform_indices = @transform_1, window_bounds = array<i64: 2, 128, 128>}, {pipeline_mode = #tpu.pipeline_mode<synchronous>, transform_indices = @transform_2, window_bounds = array<i64: 2, 1, 128>}, {transform_indices = @transform_3, window_bounds = array<i64: 8, 128>}]} {
    %c0 = arith.constant 0 : index
    %c0_0 = arith.constant 0 : index
    %0 = vector.load %arg1[%c0, %c0_0] : memref<8x128xf32, #tpu.memory_space<vmem>>, vector<8x128xf32>
    %1 = arith.truncf %0 : vector<8x128xf32> to vector<8x128xbf16>
    %c0_1 = arith.constant 0 : index
    %c0_2 = arith.constant 0 : index
    %c0_3 = arith.constant 0 : index
    %2 = vector.load %arg2[%c0_1, %c0_2, %c0_3] : memref<2x128x128xbf16, #tpu.memory_space<vmem>>, vector<1x128x128xbf16>
    %3 = vector.shape_cast %2 : vector<1x128x128xbf16> to vector<128x128xbf16>
    %cst = arith.constant dense<0.000000e+00> : vector<8x128xf32>
    %4 = tpu.matmul %1, %3, %cst {dimension_numbers = #tpu.dot_dimension_numbers<[1], [0], [0], [1], [0, 0, 1, 1], [], []>} : vector<8x128xbf16>, vector<128x128xbf16>, vector<8x128xf32> -> vector<8x128xf32>
    %c0_4 = arith.constant 0 : index
    %c0_5 = arith.constant 0 : index
    %c0_6 = arith.constant 0 : index
    %5 = vector.load %arg3[%c0_4, %c0_5, %c0_6] : memref<2x1x128xf32, #tpu.memory_space<vmem>>, vector<1x1x128xf32>
    %6 = vector.shape_cast %5 : vector<1x1x128xf32> to vector<1x128xf32>
    %7 = vector.broadcast %6 : vector<1x128xf32> to vector<8x128xf32>
    %8 = arith.addf %4, %7 : vector<8x128xf32>
    %cst_7 = arith.constant 0.000000e+00 : f32
    %9 = vector.broadcast %cst_7 : f32 to vector<8x128xf32>
    %10 = arith.maximumf %8, %9 : vector<8x128xf32>
    %11 = arith.truncf %10 : vector<8x128xf32> to vector<8x128xbf16>
    %c1 = arith.constant 1 : index
    %c0_8 = arith.constant 0 : index
    %c0_9 = arith.constant 0 : index
    %12 = vector.load %arg2[%c1, %c0_8, %c0_9] : memref<2x128x128xbf16, #tpu.memory_space<vmem>>, vector<1x128x128xbf16>
    %13 = vector.shape_cast %12 : vector<1x128x128xbf16> to vector<128x128xbf16>
    %cst_10 = arith.constant dense<0.000000e+00> : vector<8x128xf32>
    %14 = tpu.matmul %11, %13, %cst_10 {dimension_numbers = #tpu.dot_dimension_numbers<[1], [0], [0], [1], [0, 0, 1, 1], [], []>} : vector<8x128xbf16>, vector<128x128xbf16>, vector<8x128xf32> -> vector<8x128xf32>
    %c1_11 = arith.constant 1 : index
    %c0_12 = arith.constant 0 : index
    %c0_13 = arith.constant 0 : index
    %15 = vector.load %arg3[%c1_11, %c0_12, %c0_13] : memref<2x1x128xf32, #tpu.memory_space<vmem>>, vector<1x1x128xf32>
    %16 = vector.shape_cast %15 : vector<1x1x128xf32> to vector<1x128xf32>
    %17 = vector.broadcast %16 : vector<1x128xf32> to vector<8x128xf32>
    %18 = arith.addf %14, %17 : vector<8x128xf32>
    %cst_14 = arith.constant 0.000000e+00 : f32
    %19 = vector.broadcast %cst_14 : f32 to vector<8x128xf32>
    %20 = arith.maximumf %18, %19 : vector<8x128xf32>
    %c0_15 = arith.constant 0 : index
    %c0_16 = arith.constant 0 : index
    %21 = vector.load %arg4[%c0_15, %c0_16] : memref<8x128xf32, #tpu.memory_space<vmem>>, vector<8x128xf32>
    tpu.vector_store %arg4[%c0_15, %c0_16], %20 {strides = array<i32>} : memref<8x128xf32, #tpu.memory_space<vmem>>, vector<8x128xf32>,
    return
  }
  func.func @transform_0(%arg0: i32) -> (i32, i32) {
    %c0_i32 = arith.constant 0 : i32
    %c0_i32_0 = arith.constant 0 : i32
    return %arg0, %c0_i32 : i32, i32
  }
  func.func @transform_1(%arg0: i32) -> (i32, i32, i32) {
    %c0_i32 = arith.constant 0 : i32
    %c0_i32_0 = arith.constant 0 : i32
    %c0_i32_1 = arith.constant 0 : i32
    %c0_i32_2 = arith.constant 0 : i32
    return %c0_i32, %c0_i32_0, %c0_i32_1 : i32, i32, i32
  }
  func.func @transform_2(%arg0: i32) -> (i32, i32, i32) {
    %c0_i32 = arith.constant 0 : i32
    %c0_i32_0 = arith.constant 0 : i32
    %c0_i32_1 = arith.constant 0 : i32
    %c0_i32_2 = arith.constant 0 : i32
    return %c0_i32, %c0_i32_0, %c0_i32_1 : i32, i32, i32
  }
  func.func @transform_3(%arg0: i32) -> (i32, i32) {
    %c0_i32 = arith.constant 0 : i32
    %c0_i32_0 = arith.constant 0 : i32
    return %arg0, %c0_i32 : i32, i32
  }
}

</mosaic_0001>

<bundles_post_ra>
// kernel: tpu_custom_call.1
= control target key start
LH: loop header
LB: loop body
LE: loop exit
PB: predicated region body
PF: predicated region fallthrough
CT: control target
= control target key end

     0   :  { %8 = vsyncpa [#allocation3], 0  ;;  %s536_s0 = inlined_call_operand.hbm [shape: f32[8,128], index: 0, kind: input, shape index: {}]   ;;  %s537_s1 = inlined_call_operand.hbm [shape: bf16[2,128,128], index: 1, kind: input, shape index: {}]   ;;  %s538_s2 = inlined_call_operand.vmem [shape: f32[2,1,128], index: 2, kind: input, shape index: {}]   ;;  %s539_s3 = inlined_call_operand.hbm [shape: f32[8,128], index: 3, kind: output, shape index: {}]  }
   0x1   :  { %9 = vsyncpa [#allocation6], 0 }
   0x2   :  { %10 = vsyncpa [#allocation4], 0  ;;  %s460_s12 = smov [#allocation2]   ;;  %s461_s14 = smov [#allocation5]  }
   0x3   :  { %s17_s13 = sshll.u32 %s460_s12, 4  ;;  %s26_s15 = sshll.u32 %s461_s14, 4  ;;  %s18_s13 = int_to_ptr.vmem [resolvable:$true] %s17_s13  ;;  %s487_s15 = int_to_ptr.vmem [resolvable:$true] %s26_s15 }
   0x4   :  { %s388_s18 = scalar_lea.hbm %s536_s0, 128 }
   0x5   :  { %p389_p0 = scmp.ne.s32.totalorder %s536_s0, %s388_s18  ;;  %p392_p1 = scmp.lt.u32.totalorder %s388_s18, %s536_s0 }
   0x7   :  { %p394_p2 = pnand %p392_p1, %p389_p0 }
   0x9   :  { %397 = shalt.err (!%p394_p2)
}
   0xa   :  { %s398_s23 = scalar_lea.vmem %s18_s13, 128  ;;  %p403_p4 = scmp.lt.s32.totalorder %s18_s13, %s18_s13 }
   0xb   :  { %p399_p3 = scmp.ne.s32.totalorder %s18_s13, %s398_s23  ;;  %p404_p5 = scmp.lt.s32.totalorder %s398_s23, %s398_s23 }
   0xd   :  { %p405_p6 = por %p404_p5, %p403_p4 }
   0xf   :  { %p406_p7 = pnand %p405_p6, %p399_p3 }
  0x11   :  { %409 = shalt.err (!%p406_p7)
}
  0x12   :  { %20 = dma.hbm_to_vmem [thread:$0]  %s536_s0, 128, %s18_s13, [#allocation3]  }
  0x13   :  { %s410_s28 = scalar_lea.hbm %s537_s1, 2048 }
  0x14   :  { %p411_p8 = scmp.ne.s32.totalorder %s537_s1, %s410_s28  ;;  %p414_p9 = scmp.lt.u32.totalorder %s410_s28, %s537_s1 }
  0x16   :  { %p416_p10 = pnand %p414_p9, %p411_p8 }
  0x18   :  { %419 = shalt.err (!%p416_p10)
}
  0x19   :  { %s420_s6 = scalar_lea.vmem %s487_s15, 2048  ;;  %p425_p12 = scmp.lt.s32.totalorder %s487_s15, %s487_s15 }
  0x1a   :  { %p421_p11 = scmp.ne.s32.totalorder %s487_s15, %s420_s6  ;;  %p426_p13 = scmp.lt.s32.totalorder %s420_s6, %s420_s6 }
  0x1c   :  { %p427_p0 = por %p426_p13, %p425_p12 }
  0x1e   :  { %p428_p1 = pnand %p427_p0, %p421_p11 }
  0x20   :  { %431 = shalt.err (!%p428_p1)
}
  0x21   :  { %s462_s0 = smov 64   ;;  %s463_s7 = smov 4  }
  0x22   :  { %32 = dma.hbm_to_vmem [thread:$0]  %s537_s1, 2048, %s487_s15, [#allocation6], %s462_s0, %s462_s0, %s463_s7  }
  0x23   :  { %454 = dma.done.wait [#allocation3], 128  }
  0x24   :  { %455 = vsyncadd [#allocation3], 4294967168 }
  0x25   :  { %456 = dma.done.wait [#allocation6], 2048  }
  0x26   :  { %457 = vsyncadd [#allocation6], 4294965248  ;;  %v464_v0 = vmov 0.0   ;;  %vm465_vm0 = vmmov 0   ;;  %v372_v1 = vld [vmem:[#allocation5] sm:$0xff]   ;;  %v373_v2 = vld [vmem:[#allocation5 + $0x8] sm:$0xff]  }
  0x27   :  { %325 = vmatprep.subr.bf16.mxu0 %v464_v0  ;;  %341 = vmatprep.mubr.msk.bf16.mxu0 %vm465_vm0, %v464_v0  ;;  %v374_v3 = vld [vmem:[#allocation5 + $0x10] sm:$0xff]   ;;  %v380_v4 = vld [vmem:[#allocation5 + $0x40] sm:$0xff]   ;;  %v375_v5 = vld [vmem:[#allocation5 + $0x18] sm:$0xff]   ;;  %s466_s13 = smov [#allocation7]  }
  0x28   :  { %345 = vmatprep.subr.bf16.mxu1 %v464_v0  ;;  %361 = vmatprep.mubr.msk.bf16.mxu1 %vm465_vm0, %v464_v0  ;;  %v381_v6 = vld [vmem:[#allocation5 + $0x48] sm:$0xff]   ;;  %v376_v7 = vld [vmem:[#allocation5 + $0x20] sm:$0xff]   ;;  %v382_v8 = vld [vmem:[#allocation5 + $0x50] sm:$0xff]   ;;  %s278_s14 = sshll.u32 %s466_s13, 4  ;;  %s279_s14 = int_to_ptr.vmem [resolvable:$true] %s278_s14 }
  0x29   :  { %326 = vmatpush3.bf16.msra.mxu0 %v372_v1  ;;  %346 = vmatpush3.bf16.msra.mxu1 %v380_v4  ;;  %v377_v9 = vld [vmem:[#allocation5 + $0x28] sm:$0xff]   ;;  %v383_v10 = vld [vmem:[#allocation5 + $0x58] sm:$0xff]   ;;  %v378_v11 = vld [vmem:[#allocation5 + $0x30] sm:$0xff]   ;;  %s432_s15 = scalar_lea.vmem %s279_s14, 128  ;;  %p437_p3 = scmp.lt.s32.totalorder %s279_s14, %s279_s14 }
  0x2a   :  { %327 = vmatprep.subr.bf16.mxu0 %v464_v0  ;;  %347 = vmatprep.subr.bf16.mxu1 %v464_v0  ;;  %v384_v12 = vld [vmem:[#allocation5 + $0x60] sm:$0xff]   ;;  %v379_v13 = vld [vmem:[#allocation5 + $0x38] sm:$0xff]   ;;  %v385_v15 = vld [vmem:[#allocation5 + $0x68] sm:$0xff]   ;;  %p433_p2 = scmp.ne.s32.totalorder %s279_s14, %s432_s15  ;;  %p438_p4 = scmp.lt.s32.totalorder %s432_s15, %s432_s15 }
  0x2b   :  { %v42_v14 = vld [vmem:[#allocation2] sm:$0xff]  ;;  %v386_v17 = vld [vmem:[#allocation5 + $0x70] sm:$0xff]  }
  0x2c   :  { %v43_v16 = vpack.c.bf16 %v42_v14, %v42_v14  ;;  %v387_v18 = vld [vmem:[#allocation5 + $0x78] sm:$0xff]   ;;  %p439_p5 = por %p438_p4, %p437_p3 }
  0x2d   :  { %328 = vmatpush3.bf16.msra.mxu0 %v373_v2  ;;  %348 = vmatpush3.bf16.msra.mxu1 %v381_v6  ;;  %v288_v19 = vld [vmem:[%s538_s2] ss:$0 sm:$0xff]  ;;  %v298_v27 = vld [vmem:[%s538_s2 + $0x1] ss:$0 sm:$0xff] }
  0x2e   :  { %329 = vmatprep.subr.bf16.mxu0 %v464_v0  ;;  %349 = vmatprep.subr.bf16.mxu1 %v464_v0  ;;  %p440_p6 = pnand %p439_p5, %p433_p2 }
  0x31   :  { %330 = vmatpush3.bf16.msra.mxu0 %v374_v3  ;;  %350 = vmatpush3.bf16.msra.mxu1 %v382_v8 }
  0x32   :  { %331 = vmatprep.subr.bf16.mxu0 %v464_v0  ;;  %351 = vmatprep.subr.bf16.mxu1 %v464_v0 }
  0x35   :  { %332 = vmatpush3.bf16.msra.mxu0 %v375_v5  ;;  %352 = vmatpush3.bf16.msra.mxu1 %v383_v10 }
  0x36   :  { %333 = vmatprep.subr.bf16.mxu0 %v464_v0  ;;  %353 = vmatprep.subr.bf16.mxu1 %v464_v0 }
  0x39   :  { %334 = vmatpush3.bf16.msra.mxu0 %v376_v7  ;;  %354 = vmatpush3.bf16.msra.mxu1 %v384_v12 }
  0x3a   :  { %335 = vmatprep.subr.bf16.mxu0 %v464_v0  ;;  %355 = vmatprep.subr.bf16.mxu1 %v464_v0 }
  0x3d   :  { %336 = vmatpush3.bf16.msra.mxu0 %v377_v9  ;;  %356 = vmatpush3.bf16.msra.mxu1 %v385_v15 }
  0x3e   :  { %337 = vmatprep.subr.bf16.mxu0 %v464_v0  ;;  %357 = vmatprep.subr.bf16.mxu1 %v464_v0 }
  0x41   :  { %338 = vmatpush3.bf16.msra.mxu0 %v378_v11  ;;  %358 = vmatpush3.bf16.msra.mxu1 %v386_v17 }
  0x42   :  { %339 = vmatprep.subr.bf16.mxu0 %v464_v0  ;;  %359 = vmatprep.subr.bf16.mxu1 %v464_v0 }
  0x45   :  { %340 = vmatpush3.bf16.msra.mxu0 %v379_v13  ;;  %360 = vmatpush3.bf16.msra.mxu1 %v387_v18 }
  0x48   :  { %342 = vmatmul.mubr.bf16.vlgmr.msra.gmra.mrb[0].mxu0 %v43_v16 }
 0x11b   :  { %v149_v20 = vpop.f32.mrb[0].mxu0 }
 0x11c   :  { %v150_v21 = vadd.f32 %v288_v19, %v149_v20  ;;  %v343_v22 = vpop.f32.mrb[1].mxu0 }
 0x11d   :  { %v152_v23 = vpop.f32.mrb[2].mxu0 }
 0x11e   :  { %v155_v24 = vmax.f32 %v150_v21, 0.0  ;;  %v344_v25 = vpop.f32.mrb[3].mxu0 }
 0x120   :  { %v156_v26 = vpack.c.bf16 %v155_v24, %v155_v24 }
 0x122   :  { %362 = vmatmul.mubr.bf16.vlgmr.msra.gmra.mrb[0].mxu1 %v156_v26 }
 0x1f5   :  { %v264_v28 = vpop.f32.mrb[0].mxu1 }
 0x1f6   :  { %v265_v29 = vadd.f32 %v298_v27, %v264_v28  ;;  %v363_v30 = vpop.f32.mrb[1].mxu1 }
 0x1f7   :  { %v267_v31 = vpop.f32.mrb[2].mxu1 }
 0x1f8   :  { %v270_v32 = vmax.f32 %v265_v29, 0.0  ;;  %v364_v33 = vpop.f32.mrb[3].mxu1 }
 0x1fa   :  { %271 = vst [vmem:[#allocation7] sm:$0xff] %v270_v32 }
 0x1fb   :  { %443 = shalt.err (!%p440_p6)
}
 0x1fc   :  { %s444_s2 = scalar_lea.hbm %s539_s3, 128 }
 0x1fd   :  { %p445_p7 = scmp.ne.s32.totalorder %s539_s3, %s444_s2  ;;  %p448_p8 = scmp.lt.u32.totalorder %s444_s2, %s539_s3 }
 0x1ff   :  { %p450_p9 = pnand %p448_p8, %p445_p7 }
 0x201   :  { %453 = shalt.err (!%p450_p9)
}
 0x202   :  { %281 = dma.vmem_to_hbm [thread:$0]  %s279_s14, 128, %s539_s3, [#allocation4]  }
 0x203   :  { %458 = dma.done.wait [#allocation4], 128  }
 0x204   :  { %459 = vsyncadd [#allocation4], 4294967168 }
 0x205   :  { %285 = vsyncpa [#allocation3], 1 }
 0x206   :  { %286 = vsyncpa [#allocation6], 1 }
 0x207   :  { %287 = vsyncpa [#allocation4], 1 }

</bundles_post_ra>
